<compile_context>
chip_gen: v6e
topology: v6e:2x2x1
jax: 0.10.0
libtpu: 0.0.40
codegen_flags: <defaults>
</compile_context>

<pallas_src>
import functools

import jax
import jax.numpy as jnp
from jax.experimental import pallas as pl
from jax.experimental.pallas import tpu as pltpu

BN_EPS = 1e-5
LANE = 128


def _round_up(x, m):
    return ((x + m - 1) // m) * m


def _controller_kernel(*refs):
    """Fused Linear -> ReLU -> BatchNorm stack, all layers in one kernel.

    refs layout:
      refs[0]                        x_ref   (N, F_in)                 VMEM
      refs[1 + 4*i : 1 + 4*(i+1)]    layer i: w_t (F_in_i, F_out_i),
                                              b, gamma, beta (1, F_out_i)
      refs[-1]                       o_ref   (N, F_out_last)           VMEM
    All F_out_i are multiples of 128 (lane-dense); padded columns are zero.
    """
    x_ref = refs[0]
    o_ref = refs[-1]
    param_refs = refs[1:-1]
    num_layers = len(param_refs) // 4

    h = x_ref[...]
    n = h.shape[0]
    inv_n = 1.0 / n
    for i in range(num_layers):              # static unroll over the layer list
        w_ref, b_ref, g_ref, bt_ref = param_refs[4 * i:4 * i + 4]
        # Linear (MXU) + bias
        h = jnp.dot(h, w_ref[...], preferred_element_type=jnp.float32)
        h = h + b_ref[...]
        # ReLU (VPU)
        h = jnp.maximum(h, 0.0)
        # BatchNorm over the batch axis, per feature (training-mode stats,
        # biased variance -- matches PyTorch forward() normalization).
        mean = jnp.sum(h, axis=0, keepdims=True) * inv_n
        centered = h - mean
        var = jnp.sum(centered * centered, axis=0, keepdims=True) * inv_n
        inv_std = jax.lax.rsqrt(var + BN_EPS)
        h = centered * inv_std * g_ref[...] + bt_ref[...]
    o_ref[...] = h


def _run_controller(x, flat_params, out_pad_last):
    n = x.shape[0]
    vmem_spec = pl.BlockSpec(memory_space=pltpu.MemorySpace.VMEM)
    return pl.pallas_call(
        _controller_kernel,
        out_shape=jax.ShapeDtypeStruct((n, out_pad_last), jnp.float32),
        in_specs=[vmem_spec] * (1 + len(flat_params)),
        out_specs=vmem_spec,
        compiler_params=pltpu.CompilerParams(
            vmem_limit_bytes=32 * 1024 * 1024),
    )(x, *flat_params)


class FCControllerPallas:
    """JAX/Pallas re-implementation of FCController (activation='relu')."""

    def __init__(self, input_size, layers_sizes, key):
        self.layers_sizes = tuple(layers_sizes)
        flat = []
        raw = []
        in_size = input_size
        in_pad = input_size           # x is fed unpadded; later layers are 128-padded
        for hidden_size in self.layers_sizes:
            out_pad = _round_up(hidden_size, LANE)
            key, kw, kb = jax.random.split(key, 3)
            # Deterministic init (roughly PyTorch Linear's uniform fan-in init).
            bound = 1.0 / float(in_size) ** 0.5
            w = jax.random.uniform(
                kw, (hidden_size, in_size), jnp.float32, -bound, bound)
            b = jax.random.uniform(
                kb, (hidden_size,), jnp.float32, -bound, bound)
            raw.append((w, b))
            # Pad W.T to (in_pad, out_pad) with zeros; zero rows/cols keep the
            # padded feature columns exactly zero throughout the stack.
            w_t = jnp.zeros((in_pad, out_pad), jnp.float32)
            w_t = w_t.at[:in_size, :hidden_size].set(jnp.transpose(w))
            b_p = jnp.zeros((1, out_pad), jnp.float32).at[:, :hidden_size].set(b)
            g_p = jnp.zeros((1, out_pad), jnp.float32).at[:, :hidden_size].set(1.0)
            bt_p = jnp.zeros((1, out_pad), jnp.float32)
            flat.extend([w_t, b_p, g_p, bt_p])
            in_size = hidden_size
            in_pad = out_pad
        self.flat_params = tuple(flat)
        self.raw_params = tuple(raw)
        self.out_pad_last = in_pad
        self.out_size_last = in_size

    @functools.partial(jax.jit, static_argnums=0)
    def __call__(self, x):
        out_padded = _run_controller(x, self.flat_params, self.out_pad_last)
        return out_padded[:, :self.out_size_last]


def _reference_forward(x, raw_params):
    """Pure-JAX reference: Linear -> ReLU -> BatchNorm (gamma=1, beta=0)."""
    h = x
    for (w, b) in raw_params:
        h = h @ jnp.transpose(w) + b
        h = jnp.maximum(h, 0.0)
        mean = jnp.mean(h, axis=0, keepdims=True)
        var = jnp.mean((h - mean) ** 2, axis=0, keepdims=True)
        h = (h - mean) * jax.lax.rsqrt(var + BN_EPS)
    return h


if __name__ == "__main__":
    key = jax.random.PRNGKey(0)
    k_in, k_params = jax.random.split(key)

    batch = 8
    input_size = 32
    layers_sizes = (32, 16)

    x = jax.random.normal(k_in, (batch, input_size), dtype=jnp.float32)

    model = FCControllerPallas(input_size, layers_sizes, k_params)
    out = model(x)
    out = jax.block_until_ready(out)

    assert out.shape == (batch, layers_sizes[-1])
    assert jnp.all(jnp.isfinite(out))

    ref = _reference_forward(x, model.raw_params)
    assert jnp.allclose(out, ref, atol=2e-3, rtol=2e-3), (
        float(jnp.max(jnp.abs(out - ref))))

    print("KERNEL_OK")
</pallas_src>

<mosaic_0001>
module attributes {stable_mosaic.version = 11 : i64} {
  func.func @_controller_kernel(%arg0: memref<8x32xf32, #tpu.memory_space<vmem>>, %arg1: memref<32x128xf32, #tpu.memory_space<vmem>>, %arg2: memref<1x128xf32, #tpu.memory_space<vmem>>, %arg3: memref<1x128xf32, #tpu.memory_space<vmem>>, %arg4: memref<1x128xf32, #tpu.memory_space<vmem>>, %arg5: memref<128x128xf32, #tpu.memory_space<vmem>>, %arg6: memref<1x128xf32, #tpu.memory_space<vmem>>, %arg7: memref<1x128xf32, #tpu.memory_space<vmem>>, %arg8: memref<1x128xf32, #tpu.memory_space<vmem>>, %arg9: memref<8x128xf32, #tpu.memory_space<vmem>>) attributes {dimension_semantics = [], scalar_prefetch = 0 : i64, scratch_operands = 0 : i64, tpu.core_type = #tpu.core_type<tc>} {
    %c0 = arith.constant 0 : index
    %c0_0 = arith.constant 0 : index
    %0 = vector.load %arg0[%c0, %c0_0] : memref<8x32xf32, #tpu.memory_space<vmem>>, vector<8x32xf32>
    %c0_1 = arith.constant 0 : index
    %c0_2 = arith.constant 0 : index
    %1 = vector.load %arg1[%c0_1, %c0_2] : memref<32x128xf32, #tpu.memory_space<vmem>>, vector<32x128xf32>
    %cst = arith.constant dense<0.000000e+00> : vector<8x128xf32>
    %2 = tpu.matmul %0, %1, %cst {dimension_numbers = #tpu.dot_dimension_numbers<[1], [0], [0], [1], [0, 0, 1, 1], [], []>} : vector<8x32xf32>, vector<32x128xf32>, vector<8x128xf32> -> vector<8x128xf32>
    %c0_3 = arith.constant 0 : index
    %c0_4 = arith.constant 0 : index
    %3 = vector.load %arg2[%c0_3, %c0_4] : memref<1x128xf32, #tpu.memory_space<vmem>>, vector<1x128xf32>
    %4 = vector.broadcast %3 : vector<1x128xf32> to vector<8x128xf32>
    %5 = arith.addf %2, %4 : vector<8x128xf32>
    %cst_5 = arith.constant 0.000000e+00 : f32
    %6 = vector.broadcast %cst_5 : f32 to vector<8x128xf32>
    %7 = arith.maximumf %5, %6 : vector<8x128xf32>
    %cst_6 = arith.constant dense<0.000000e+00> : vector<128xf32>
    %8 = vector.multi_reduction <add>, %7, %cst_6 [0] : vector<8x128xf32> to vector<128xf32>
    %9 = vector.shape_cast %8 : vector<128xf32> to vector<1x128xf32>
    %cst_7 = arith.constant 1.250000e-01 : f32
    %10 = vector.broadcast %cst_7 : f32 to vector<1x128xf32>
    %11 = arith.mulf %9, %10 : vector<1x128xf32>
    %12 = vector.broadcast %11 : vector<1x128xf32> to vector<8x128xf32>
    %13 = arith.subf %7, %12 : vector<8x128xf32>
    %14 = arith.mulf %13, %13 : vector<8x128xf32>
    %cst_8 = arith.constant dense<0.000000e+00> : vector<128xf32>
    %15 = vector.multi_reduction <add>, %14, %cst_8 [0] : vector<8x128xf32> to vector<128xf32>
    %16 = vector.shape_cast %15 : vector<128xf32> to vector<1x128xf32>
    %cst_9 = arith.constant 1.250000e-01 : f32
    %17 = vector.broadcast %cst_9 : f32 to vector<1x128xf32>
    %18 = arith.mulf %16, %17 : vector<1x128xf32>
    %cst_10 = arith.constant 9.99999974E-6 : f32
    %19 = vector.broadcast %cst_10 : f32 to vector<1x128xf32>
    %20 = arith.addf %18, %19 : vector<1x128xf32>
    %21 = math.rsqrt %20 : vector<1x128xf32>
    %22 = vector.broadcast %21 : vector<1x128xf32> to vector<8x128xf32>
    %23 = arith.mulf %13, %22 : vector<8x128xf32>
    %c0_11 = arith.constant 0 : index
    %c0_12 = arith.constant 0 : index
    %24 = vector.load %arg3[%c0_11, %c0_12] : memref<1x128xf32, #tpu.memory_space<vmem>>, vector<1x128xf32>
    %25 = vector.broadcast %24 : vector<1x128xf32> to vector<8x128xf32>
    %26 = arith.mulf %23, %25 : vector<8x128xf32>
    %c0_13 = arith.constant 0 : index
    %c0_14 = arith.constant 0 : index
    %27 = vector.load %arg4[%c0_13, %c0_14] : memref<1x128xf32, #tpu.memory_space<vmem>>, vector<1x128xf32>
    %28 = vector.broadcast %27 : vector<1x128xf32> to vector<8x128xf32>
    %29 = arith.addf %26, %28 : vector<8x128xf32>
    %c0_15 = arith.constant 0 : index
    %c0_16 = arith.constant 0 : index
    %30 = vector.load %arg5[%c0_15, %c0_16] : memref<128x128xf32, #tpu.memory_space<vmem>>, vector<128x128xf32>
    %cst_17 = arith.constant dense<0.000000e+00> : vector<8x128xf32>
    %31 = tpu.matmul %29, %30, %cst_17 {dimension_numbers = #tpu.dot_dimension_numbers<[1], [0], [0], [1], [0, 0, 1, 1], [], []>} : vector<8x128xf32>, vector<128x128xf32>, vector<8x128xf32> -> vector<8x128xf32>
    %c0_18 = arith.constant 0 : index
    %c0_19 = arith.constant 0 : index
    %32 = vector.load %arg6[%c0_18, %c0_19] : memref<1x128xf32, #tpu.memory_space<vmem>>, vector<1x128xf32>
    %33 = vector.broadcast %32 : vector<1x128xf32> to vector<8x128xf32>
    %34 = arith.addf %31, %33 : vector<8x128xf32>
    %cst_20 = arith.constant 0.000000e+00 : f32
    %35 = vector.broadcast %cst_20 : f32 to vector<8x128xf32>
    %36 = arith.maximumf %34, %35 : vector<8x128xf32>
    %cst_21 = arith.constant dense<0.000000e+00> : vector<128xf32>
    %37 = vector.multi_reduction <add>, %36, %cst_21 [0] : vector<8x128xf32> to vector<128xf32>
    %38 = vector.shape_cast %37 : vector<128xf32> to vector<1x128xf32>
    %cst_22 = arith.constant 1.250000e-01 : f32
    %39 = vector.broadcast %cst_22 : f32 to vector<1x128xf32>
    %40 = arith.mulf %38, %39 : vector<1x128xf32>
    %41 = vector.broadcast %40 : vector<1x128xf32> to vector<8x128xf32>
    %42 = arith.subf %36, %41 : vector<8x128xf32>
    %43 = arith.mulf %42, %42 : vector<8x128xf32>
    %cst_23 = arith.constant dense<0.000000e+00> : vector<128xf32>
    %44 = vector.multi_reduction <add>, %43, %cst_23 [0] : vector<8x128xf32> to vector<128xf32>
    %45 = vector.shape_cast %44 : vector<128xf32> to vector<1x128xf32>
    %cst_24 = arith.constant 1.250000e-01 : f32
    %46 = vector.broadcast %cst_24 : f32 to vector<1x128xf32>
    %47 = arith.mulf %45, %46 : vector<1x128xf32>
    %cst_25 = arith.constant 9.99999974E-6 : f32
    %48 = vector.broadcast %cst_25 : f32 to vector<1x128xf32>
    %49 = arith.addf %47, %48 : vector<1x128xf32>
    %50 = math.rsqrt %49 : vector<1x128xf32>
    %51 = vector.broadcast %50 : vector<1x128xf32> to vector<8x128xf32>
    %52 = arith.mulf %42, %51 : vector<8x128xf32>
    %c0_26 = arith.constant 0 : index
    %c0_27 = arith.constant 0 : index
    %53 = vector.load %arg7[%c0_26, %c0_27] : memref<1x128xf32, #tpu.memory_space<vmem>>, vector<1x128xf32>
    %54 = vector.broadcast %53 : vector<1x128xf32> to vector<8x128xf32>
    %55 = arith.mulf %52, %54 : vector<8x128xf32>
    %c0_28 = arith.constant 0 : index
    %c0_29 = arith.constant 0 : index
    %56 = vector.load %arg8[%c0_28, %c0_29] : memref<1x128xf32, #tpu.memory_space<vmem>>, vector<1x128xf32>
    %57 = vector.broadcast %56 : vector<1x128xf32> to vector<8x128xf32>
    %58 = arith.addf %55, %57 : vector<8x128xf32>
    %c0_30 = arith.constant 0 : index
    %c0_31 = arith.constant 0 : index
    %59 = vector.load %arg9[%c0_30, %c0_31] : memref<8x128xf32, #tpu.memory_space<vmem>>, vector<8x128xf32>
    tpu.vector_store %arg9[%c0_30, %c0_31], %58 {strides = array<i32>} : memref<8x128xf32, #tpu.memory_space<vmem>>, vector<8x128xf32>,
    return
  }
}

</mosaic_0001>

<bundles_post_ra>
// kernel: a_call__.1
= control target key start
LH: loop header
LB: loop body
LE: loop exit
PB: predicated region body
PF: predicated region fallthrough
CT: control target
= control target key end

     0   :  { %14 = vsyncpa [#allocation3], 0  ;;  %s623_s0 = inlined_call_operand.hbm [shape: f32[8,32], index: 0, kind: input, shape index: {}]   ;;  %s624_s1 = inlined_call_operand.hbm [shape: f32[32,128], index: 1, kind: input, shape index: {}]   ;;  %s625_s2 = inlined_call_operand.vmem [shape: f32[1,128], index: 2, kind: input, shape index: {}]   ;;  %s626_s3 = inlined_call_operand.vmem [shape: f32[1,128], index: 3, kind: input, shape index: {}]   ;;  %s627_s4 = inlined_call_operand.vmem [shape: f32[1,128], index: 4, kind: input, shape index: {}, may-alias: {4,8}]   ;;  %s628_s5 = inlined_call_operand.hbm [shape: f32[128,128], index: 5, kind: input, shape index: {}]   ;;  %s629_s6 = inlined_call_operand.vmem [shape: f32[1,128], index: 6, kind: input, shape index: {}]   ;;  %s630_s7 = inlined_call_operand.vmem [shape: f32[1,128], index: 7, kind: input, shape index: {}]   ;;  %s631_s8 = inlined_call_operand.vmem [shape: f32[1,128], index: 8, kind: input, shape index: {}, may-alias: {4,8}]   ;;  %s632_s9 = inlined_call_operand.hbm [shape: f32[8,128], index: 9, kind: output, shape index: {}]  }
   0x1   :  { %15 = vsyncpa [#allocation6], 0 }
   0x2   :  { %16 = vsyncpa [#allocation4], 0  ;;  %s513_s30 = smov [#allocation5]  }
   0x3   :  { %s32_s10 = sshll.u32 %s513_s30, 4  ;;  %s33_s10 = int_to_ptr.vmem [resolvable:$true] %s32_s10 }
   0x4   :  { %s435_s11 = scalar_lea.vmem %s33_s10, 512  ;;  %p440_p1 = scmp.lt.s32.totalorder %s33_s10, %s33_s10 }
   0x5   :  { %p436_p0 = scmp.ne.s32.totalorder %s33_s10, %s435_s11  ;;  %p441_p2 = scmp.lt.s32.totalorder %s435_s11, %s435_s11 }
   0x7   :  { %p442_p3 = por %p441_p2, %p440_p1 }
   0x9   :  { %p443_p4 = pnand %p442_p3, %p436_p0 }
   0xb   :  { %446 = shalt.err (!%p443_p4)
}
   0xc   :  { %s514_s12 = smov 128   ;;  %s515_s13 = smov 8  }
   0xd   :  { %38 = dma.hbm_to_vmem [thread:$0]  %s624_s1, 512, %s33_s10, [#allocation6], %s514_s12, %s514_s12, %s515_s13  }
   0xe   :  { %s516_s16 = smov [#allocation2]   ;;  %s517_s18 = smov [#allocation7]  }
   0xf   :  { %s23_s17 = sshll.u32 %s516_s16, 4  ;;  %s50_s19 = sshll.u32 %s517_s18, 4  ;;  %s24_s17 = int_to_ptr.vmem [resolvable:$true] %s23_s17  ;;  %s51_s19 = int_to_ptr.vmem [resolvable:$true] %s50_s19 }
  0x10   :  { %s455_s20 = scalar_lea.vmem %s24_s17, 128  ;;  %p460_p6 = scmp.lt.s32.totalorder %s24_s17, %s24_s17 }
  0x11   :  { %p456_p5 = scmp.ne.s32.totalorder %s24_s17, %s455_s20  ;;  %p461_p7 = scmp.lt.s32.totalorder %s455_s20, %s455_s20 }
  0x13   :  { %p462_p8 = por %p461_p7, %p460_p6 }
  0x15   :  { %p463_p9 = pnand %p462_p8, %p456_p5 }
  0x17   :  { %466 = shalt.err (!%p463_p9)
}
  0x18   :  { %26 = dma.hbm_to_vmem [thread:$0]  %s623_s0, 128, %s24_s17, [#allocation3]  }
  0x19   :  { %s475_s23 = scalar_lea.vmem %s51_s19, 2048  ;;  %p480_p11 = scmp.lt.s32.totalorder %s51_s19, %s51_s19 }
  0x1a   :  { %p476_p10 = scmp.ne.s32.totalorder %s51_s19, %s475_s23  ;;  %p481_p12 = scmp.lt.s32.totalorder %s475_s23, %s475_s23 }
  0x1c   :  { %p482_p13 = por %p481_p12, %p480_p11 }
  0x1e   :  { %p483_p0 = pnand %p482_p13, %p476_p10 }
  0x20   :  { %486 = shalt.err (!%p483_p0)
}
  0x21   :  { %56 = dma.hbm_to_vmem [thread:$0]  %s628_s5, 2048, %s51_s19, [#allocation6], %s514_s12, %s514_s12, %s515_s13  }
  0x22   :  { %507 = dma.done.wait [#allocation3], 128  }
  0x23   :  { %508 = vsyncadd [#allocation3], 4294967168 }
  0x24   :  { %509 = dma.done.wait [#allocation6], 2560  }
  0x25   :  { %510 = vsyncadd [#allocation6], 4294964736  ;;  %v518_v0 = vmov 0.0   ;;  %vm519_vm0 = vmmov 0   ;;  %v76_v1 = vld [vmem:[#allocation5 + $0x18] sm:$0xff]  ;;  %v75_v2 = vld [vmem:[#allocation5 + $0x10] sm:$0xff] }
  0x26   :  { %369 = vmatprep.subr.mxu0 %v518_v0  ;;  %377 = vmatprep.mubr.msk.f32.mxu0 %vm519_vm0, %v518_v0  ;;  %v74_v3 = vld [vmem:[#allocation5 + $0x8] sm:$0xff]  ;;  %v73_v4 = vld [vmem:[#allocation5] sm:$0xff]  ;;  %v72_v5 = vld [vmem:[#allocation2] sm:$0xff]  ;;  %vm84_vm1 = vcmask 261120   ;;  %s520_s10 = smov [#allocation8]  }
  0x27   :  { %380 = vmatprep.subr.mxu1 %v518_v0  ;;  %412 = vmatprep.mubr.msk.f32.mxu1 %vm519_vm0, %v518_v0  ;;  %v209_v6 = vld [vmem:[#allocation7 + $0x78] sm:$0xff]  ;;  %v208_v7 = vld [vmem:[#allocation7 + $0x70] sm:$0xff]  ;;  %v207_v8 = vld [vmem:[#allocation7 + $0x68] sm:$0xff]  ;;  %s330_s11 = sshll.u32 %s520_s10, 4  ;;  %s331_s11 = int_to_ptr.vmem [resolvable:$true] %s330_s11 }
  0x28   :  { %370 = vmatpush3.msra.mxu0 %v76_v1  ;;  %381 = vmatpush3.msra.mxu1 %v209_v6  ;;  %v206_v9 = vld [vmem:[#allocation7 + $0x60] sm:$0xff]  ;;  %v205_v10 = vld [vmem:[#allocation7 + $0x58] sm:$0xff]  ;;  %v204_v11 = vld [vmem:[#allocation7 + $0x50] sm:$0xff]  ;;  %s487_s12 = scalar_lea.vmem %s331_s11, 128  ;;  %p492_p2 = scmp.lt.s32.totalorder %s331_s11, %s331_s11 }
  0x29   :  { %371 = vmatprep.subr.mxu0 %v518_v0  ;;  %382 = vmatprep.subr.mxu1 %v518_v0  ;;  %v203_v12 = vld [vmem:[#allocation7 + $0x48] sm:$0xff]  ;;  %v202_v13 = vld [vmem:[#allocation7 + $0x40] sm:$0xff]  ;;  %v201_v14 = vld [vmem:[#allocation7 + $0x38] sm:$0xff]  ;;  %p488_p1 = scmp.ne.s32.totalorder %s331_s11, %s487_s12  ;;  %p493_p3 = scmp.lt.s32.totalorder %s487_s12, %s487_s12 }
  0x2a   :  { %372 = vmatpush3.msra.mxu0 %v75_v2  ;;  %383 = vmatpush3.msra.mxu1 %v208_v7  ;;  %v200_v15 = vld [vmem:[#allocation7 + $0x30] sm:$0xff]  ;;  %v199_v16 = vld [vmem:[#allocation7 + $0x28] sm:$0xff]  ;;  %v198_v17 = vld [vmem:[#allocation7 + $0x20] sm:$0xff] }
  0x2b   :  { %373 = vmatprep.subr.mxu0 %v518_v0  ;;  %384 = vmatprep.subr.mxu1 %v518_v0  ;;  %v197_v18 = vld [vmem:[#allocation7 + $0x18] sm:$0xff]  ;;  %v196_v19 = vld [vmem:[#allocation7 + $0x10] sm:$0xff]  ;;  %v195_v20 = vld [vmem:[#allocation7 + $0x8] sm:$0xff]  ;;  %p494_p4 = por %p493_p3, %p492_p2 }
  0x2c   :  { %374 = vmatpush3.msra.mxu0 %v74_v3  ;;  %385 = vmatpush3.msra.mxu1 %v207_v8  ;;  %v194_v21 = vld [vmem:[#allocation7] sm:$0xff]  ;;  %v340_v22 = vld [vmem:[%s625_s2] ss:$0 sm:$0xff] }
  0x2d   :  { %375 = vmatprep.subr.mxu0 %v518_v0  ;;  %386 = vmatprep.subr.mxu1 %v518_v0  ;;  %v342_v45 = vld [vmem:[%s626_s3] ss:$0 sm:$0xff]  ;;  %p495_p5 = pnand %p494_p4, %p488_p1 }
  0x2e   :  { %376 = vmatpush3.msra.mxu0 %v73_v4  ;;  %387 = vmatpush3.msra.mxu1 %v206_v9  ;;  %v343_v47 = vld [vmem:[%s627_s4] ss:$0 sm:$0xff] }
  0x2f   :  { %378 = vmatmul.mubr.msk.f32.vlgmr.msra.gmra.mxu0 %vm84_vm1, %v72_v5  ;;  %388 = vmatprep.subr.mxu1 %v518_v0  ;;  %v344_v50 = vld [vmem:[%s629_s6] ss:$0 sm:$0xff] }
  0x30   :  { %389 = vmatpush3.msra.mxu1 %v205_v10  ;;  %v345_v9 = vld [vmem:[%s630_s7] ss:$0 sm:$0xff] }
  0x31   :  { %390 = vmatprep.subr.mxu1 %v518_v0 }
  0x32   :  { %391 = vmatpush3.msra.mxu1 %v204_v11  ;;  %v346_v11 = vld [vmem:[%s631_s8] ss:$0 sm:$0xff] }
  0x33   :  { %392 = vmatprep.subr.mxu1 %v518_v0 }
  0x34   :  { %393 = vmatpush3.msra.mxu1 %v203_v12 }
  0x35   :  { %394 = vmatprep.subr.mxu1 %v518_v0 }
  0x36   :  { %395 = vmatpush3.msra.mxu1 %v202_v13 }
  0x37   :  { %396 = vmatprep.subr.mxu1 %v518_v0 }
  0x38   :  { %397 = vmatpush3.msra.mxu1 %v201_v14 }
  0x39   :  { %398 = vmatprep.subr.mxu1 %v518_v0 }
  0x3a   :  { %399 = vmatpush3.msra.mxu1 %v200_v15 }
  0x3b   :  { %400 = vmatprep.subr.mxu1 %v518_v0 }
  0x3c   :  { %401 = vmatpush3.msra.mxu1 %v199_v16 }
  0x3d   :  { %402 = vmatprep.subr.mxu1 %v518_v0 }
  0x3e   :  { %403 = vmatpush3.msra.mxu1 %v198_v17 }
  0x3f   :  { %404 = vmatprep.subr.mxu1 %v518_v0 }
  0x40   :  { %405 = vmatpush3.msra.mxu1 %v197_v18 }
  0x41   :  { %406 = vmatprep.subr.mxu1 %v518_v0 }
  0x42   :  { %407 = vmatpush3.msra.mxu1 %v196_v19 }
  0x43   :  { %408 = vmatprep.subr.mxu1 %v518_v0 }
  0x44   :  { %409 = vmatpush3.msra.mxu1 %v195_v20 }
  0x45   :  { %410 = vmatprep.subr.mxu1 %v518_v0 }
  0x46   :  { %411 = vmatpush3.msra.mxu1 %v194_v21 }
  0xef   :  { %v154_v23 = vpop.f32.mrf.mxu0 }
  0xf0   :  { %v155_v24 = vadd.f32 %v340_v22, %v154_v23 }
  0xf1   :  { %v379_v25 = vpop.f32.mrf.mxu0 }
  0xf2   :  { %v158_v26 = vmax.f32 %v155_v24, 0.0 }
  0xf4   :  { %v159_v27 = vrot.slane %v158_v26, 4 }
  0xf6   :  { %v160_v28 = vadd.f32 %v159_v27, %v158_v26 }
  0xf8   :  { %v161_v29 = vrot.slane %v160_v28, 2 }
  0xfa   :  { %v162_v30 = vadd.f32 %v161_v29, %v160_v28 }
  0xfc   :  { %v163_v31 = vrot.slane %v162_v30, 1 }
  0xfe   :  { %v164_v32 = vadd.f32 %v163_v31, %v162_v30 }
 0x100   :  { %v165_v33 = vmul.f32 0.125, %v164_v32 }
 0x102   :  { %v166_v34 = vsub.f32 %v158_v26, %v165_v33 }
 0x104   :  { %v167_v35 = vmul.f32 %v166_v34, %v166_v34 }
 0x106   :  { %v168_v36 = vrot.slane %v167_v35, 4 }
 0x108   :  { %v169_v37 = vadd.f32 %v168_v36, %v167_v35 }
 0x10a   :  { %v170_v38 = vrot.slane %v169_v37, 2 }
 0x10c   :  { %v171_v39 = vadd.f32 %v170_v38, %v169_v37 }
 0x10e   :  { %v172_v40 = vrot.slane %v171_v39, 1 }
 0x110   :  { %v173_v41 = vadd.f32 %v172_v40, %v171_v39 }
 0x112   :  { %v174_v42 = vmul.f32 0.125, %v173_v41 }
 0x114   :  { %v175_v43 = vadd.f32 1e-05, %v174_v42 }
 0x116   :  { %423 = vrsqrt.f32 %v175_v43 }
 0x123   :  { %v424_v44 = vpop.eup %423 }
 0x124   :  { %v177_v46 = vmul.f32 %v424_v44, %v166_v34 }
 0x126   :  { %v185_v48 = vmul.f32 %v342_v45, %v177_v46 }
 0x128   :  { %v193_v49 = vadd.f32 %v343_v47, %v185_v48 }
 0x12a   :  { %413 = vmatmul.mubr.f32.vlgmr.msra.gmra.mxu1 %v193_v49 }
 0x1ea   :  { %v283_v51 = vpop.f32.mrf.mxu1 }
 0x1eb   :  { %v284_v52 = vadd.f32 %v344_v50, %v283_v51 }
 0x1ec   :  { %v414_v53 = vpop.f32.mrf.mxu1 }
 0x1ed   :  { %v287_v54 = vmax.f32 %v284_v52, 0.0 }
 0x1ef   :  { %v288_v55 = vrot.slane %v287_v54, 4 }
 0x1f1   :  { %v289_v56 = vadd.f32 %v288_v55, %v287_v54 }
 0x1f3   :  { %v290_v57 = vrot.slane %v289_v56, 2 }
 0x1f5   :  { %v291_v58 = vadd.f32 %v290_v57, %v289_v56 }
 0x1f7   :  { %v292_v59 = vrot.slane %v291_v58, 1 }
 0x1f9   :  { %v293_v60 = vadd.f32 %v292_v59, %v291_v58 }
 0x1fb   :  { %v294_v61 = vmul.f32 0.125, %v293_v60 }
 0x1fd   :  { %v295_v62 = vsub.f32 %v287_v54, %v294_v61 }
 0x1ff   :  { %v296_v63 = vmul.f32 %v295_v62, %v295_v62 }
 0x201   :  { %v297_v0 = vrot.slane %v296_v63, 4 }
 0x203   :  { %v298_v1 = vadd.f32 %v297_v0, %v296_v63 }
 0x205   :  { %v299_v2 = vrot.slane %v298_v1, 2 }
 0x207   :  { %v300_v3 = vadd.f32 %v299_v2, %v298_v1 }
 0x209   :  { %v301_v4 = vrot.slane %v300_v3, 1 }
 0x20b   :  { %v302_v5 = vadd.f32 %v301_v4, %v300_v3 }
 0x20d   :  { %v303_v6 = vmul.f32 0.125, %v302_v5 }
 0x20f   :  { %v304_v7 = vadd.f32 1e-05, %v303_v6 }
 0x211   :  { %425 = vrsqrt.f32 %v304_v7 }
 0x21e   :  { %v426_v8 = vpop.eup %425 }
 0x21f   :  { %v306_v10 = vmul.f32 %v426_v8, %v295_v62 }
 0x221   :  { %v314_v12 = vmul.f32 %v345_v9, %v306_v10 }
 0x223   :  { %v322_v13 = vadd.f32 %v346_v11, %v314_v12 }
 0x225   :  { %323 = vst [vmem:[#allocation8] sm:$0xff] %v322_v13 }
 0x226   :  { %498 = shalt.err (!%p495_p5)
}
 0x227   :  { %333 = dma.vmem_to_hbm [thread:$0]  %s331_s11, 128, %s632_s9, [#allocation4]  }
 0x228   :  { %511 = dma.done.wait [#allocation4], 128  }
 0x229   :  { %512 = vsyncadd [#allocation4], 4294967168 }
 0x22a   :  { %337 = vsyncpa [#allocation3], 1 }
 0x22b   :  { %338 = vsyncpa [#allocation6], 1 }
 0x22c   :  { %339 = vsyncpa [#allocation4], 1 }

</bundles_post_ra>
